<compile_context>
chip_gen: v6e
topology: v6e:2x2x1
jax: 0.10.0
libtpu: 0.0.40
codegen_flags: <defaults>
</compile_context>

<pallas_src>
import math

import jax
import jax.numpy as jnp
from jax.experimental import pallas as pl
from jax.experimental.pallas import tpu as pltpu


def _round_up(x, m):
    return ((x + m - 1) // m) * m


def _pick_tile(total, desired, unit=128):
    """Largest multiple of `unit` that divides `total` and is <= desired."""
    desired = max(unit, min(desired, total))
    blocks = total // unit
    for d in range(desired // unit, 0, -1):
        if blocks % d == 0:
            return d * unit
    return unit


def _pad2d(a, rows, cols, dtype):
    a = a.astype(dtype)
    pr, pc = rows - a.shape[0], cols - a.shape[1]
    if pr or pc:
        a = jnp.pad(a, ((0, pr), (0, pc)))
    return a


# --------------------------------------------------------------------------
# Dense kernel:  out = lhs @ W + bias_row     (W and bias stay resident)
# --------------------------------------------------------------------------
def _dense_kernel(x_ref, w_ref, b_ref, o_ref):
    o_ref[...] = (
        jnp.dot(x_ref[...], w_ref[...], preferred_element_type=jnp.float32)
        + b_ref[...]
    ).astype(o_ref.dtype)


def _dense_matmul(lhs, w, bias_row, out_dtype, tm):
    # NOTE: W (k_pad x f_pad) is held fully in VMEM; GCN feature widths are
    # assumed modest (<= a few thousand).
    n_pad, k_pad = lhs.shape
    f_pad = w.shape[1]
    isz = lhs.dtype.itemsize
    w_isz = w.dtype.itemsize
    out_isz = jnp.dtype(out_dtype).itemsize

    vmem = (2 * tm * k_pad * isz + 2 * k_pad * f_pad * w_isz
            + 2 * 8 * f_pad * 4 + 2 * tm * f_pad * out_isz)

    return pl.pallas_call(
        _dense_kernel,
        out_shape=jax.ShapeDtypeStruct((n_pad, f_pad), out_dtype),
        grid_spec=pltpu.PrefetchScalarGridSpec(
            num_scalar_prefetch=0,
            grid=(n_pad // tm,),
            in_specs=[
                pl.BlockSpec((tm, k_pad), lambda i: (i, 0)),
                pl.BlockSpec((k_pad, f_pad), lambda i: (0, 0)),   # resident
                pl.BlockSpec((1, f_pad), lambda i: (0, 0)),       # resident
            ],
            out_specs=pl.BlockSpec((tm, f_pad), lambda i: (i, 0)),
        ),
        compiler_params=pltpu.CompilerParams(
            dimension_semantics=("parallel",),
            vmem_limit_bytes=int(vmem * 1.5) + (4 << 20),
        ),
        cost_estimate=pl.CostEstimate(
            flops=2 * n_pad * k_pad * f_pad,
            transcendentals=0,
            bytes_accessed=(n_pad * k_pad * isz + k_pad * f_pad * w_isz
                            + n_pad * f_pad * out_isz + f_pad * 4),
        ),
    )(lhs, w, bias_row)


# --------------------------------------------------------------------------
# Aggregate kernel:  out[i] = sum_k adj[i, k] @ rhs[k] + bias_row
# grid = (row tiles, K tiles); K is the innermost (reduction) axis.
# --------------------------------------------------------------------------
def _make_aggregate_kernel(rhs_resident, tk, accum_in_out):
    def kernel(adj_ref, rhs_ref, b_ref, o_ref, *scratch):
        k = pl.program_id(1)
        acc_ref = o_ref if accum_in_out else scratch[0]

        @pl.when(k == 0)
        def _init():
            acc_ref[...] = jnp.zeros_like(acc_ref)

        if rhs_resident:
            start = pl.multiple_of(k * tk, 128)
            rhs = rhs_ref[pl.ds(start, tk), :]
        else:
            rhs = rhs_ref[...]

        acc_ref[...] += jnp.dot(adj_ref[...], rhs,
                                preferred_element_type=jnp.float32)

        @pl.when(k == pl.num_programs(1) - 1)
        def _finalize():
            o_ref[...] = (acc_ref[...] + b_ref[...]).astype(o_ref.dtype)

    return kernel


def _aggregate(adj, rhs, bias_row, out_dtype, tm, tk, *,
               adj_buffer_count=2, resident_rhs_bytes=8 << 20):
    n_pad = adj.shape[0]
    feat = rhs.shape[1]
    adj_isz = adj.dtype.itemsize
    rhs_isz = rhs.dtype.itemsize
    out_isz = jnp.dtype(out_dtype).itemsize

    # Keep rhs (the N x feat operand) fully VMEM-resident when it is small:
    # constant block index -> Pallas fetches it once, no per-row-tile re-read.
    rhs_resident = n_pad * feat * rhs_isz <= resident_rhs_bytes
    # When the output is f32, accumulate directly into the (K-resident)
    # output block and skip the scratch accumulator.
    accum_in_out = jnp.dtype(out_dtype) == jnp.float32

    if rhs_resident:
        rhs_spec = pl.BlockSpec((n_pad, feat), lambda i, k: (0, 0))
        rhs_vmem = 2 * n_pad * feat * rhs_isz
    else:
        rhs_spec = pl.BlockSpec((tk, feat), lambda i, k: (k, 0))
        rhs_vmem = 2 * tk * feat * rhs_isz

    adj_kwargs = {}
    if adj_buffer_count != 2:      # optional deeper pipelining (e.g. v7x)
        adj_kwargs["pipeline_mode"] = pl.Buffered(adj_buffer_count)
    adj_spec = pl.BlockSpec((tm, tk), lambda i, k: (i, k), **adj_kwargs)

    scratch_shapes = ([] if accum_in_out
                      else [pltpu.VMEM((tm, feat), jnp.float32)])

    vmem = (max(2, adj_buffer_count) * tm * tk * adj_isz + rhs_vmem
            + 2 * tm * feat * out_isz + 2 * 8 * feat * 4
            + (0 if accum_in_out else tm * feat * 4))

    return pl.pallas_call(
        _make_aggregate_kernel(rhs_resident, tk, accum_in_out),
        out_shape=jax.ShapeDtypeStruct((n_pad, feat), out_dtype),
        grid_spec=pltpu.PrefetchScalarGridSpec(
            num_scalar_prefetch=0,
            grid=(n_pad // tm, n_pad // tk),
            in_specs=[adj_spec, rhs_spec,
                      pl.BlockSpec((1, feat), lambda i, k: (0, 0))],
            out_specs=pl.BlockSpec((tm, feat), lambda i, k: (i, 0)),
            scratch_shapes=scratch_shapes,
        ),
        compiler_params=pltpu.CompilerParams(
            dimension_semantics=("parallel", "arbitrary"),
            vmem_limit_bytes=int(vmem * 1.5) + (4 << 20),
        ),
        cost_estimate=pl.CostEstimate(
            flops=2 * n_pad * n_pad * feat,
            transcendentals=0,
            bytes_accessed=(n_pad * n_pad * adj_isz
                            + (n_pad * feat * rhs_isz if rhs_resident
                               else (n_pad // tm) * n_pad * feat * rhs_isz)
                            + n_pad * feat * out_isz + feat * 4),
        ),
    )(adj, rhs, bias_row)


# --------------------------------------------------------------------------
# Public wrapper
# --------------------------------------------------------------------------
def graph_convolution(x, adj, weight, bias, *, tm=512, tk=None, tm_dense=1024,
                      compute_dtype=jnp.float32, adj_buffer_count=2,
                      resident_rhs_bytes=8 << 20):
    """Pallas TPU implementation of GraphConvolutionLayer.forward:
         out = adj @ (x @ weight) + bias
    """
    n, in_feats = x.shape
    out_feats = weight.shape[1]
    assert adj.shape == (n, n)
    assert weight.shape == (in_feats, out_feats)
    assert bias.shape == (out_feats,)

    out_dtype = x.dtype
    cd = jnp.dtype(compute_dtype)

    in_pad = _round_up(in_feats, 128)
    out_pad = _round_up(out_feats, 128)
    n_pad = _round_up(n, 128)          # pad ONLY to 128, never to tk

    # ---- tile selection ----------------------------------------------------
    desired_tm, desired_td = tm, tm_dense
    if n_pad >= 256:                   # v7x megacore: keep >= 2 row tiles
        desired_tm = min(desired_tm, n_pad // 2)
        desired_td = min(desired_td, n_pad // 2)
    tm_r = _pick_tile(n_pad, desired_tm)
    td_r = _pick_tile(n_pad, desired_td)
    if tk is None:
        tk = 2048 if cd.itemsize <= 2 else 1024
    tk_r = _pick_tile(n_pad, tk)

    # ---- operand staging (avoid extra full passes over the N^2 adjacency) --
    if n == n_pad:
        adj_p = adj                    # stream as-is; no wrapper copy / cast
    else:
        # A padded copy is unavoidable; narrow it in the same pass if a
        # narrower compute dtype was requested (XLA fuses cast + pad).
        adj_dt = cd if cd.itemsize < adj.dtype.itemsize else adj.dtype
        adj_p = _pad2d(adj, n_pad, n_pad, adj_dt)

    x_p = _pad2d(x, n_pad, in_pad, cd)
    w_p = _pad2d(weight, in_pad, out_pad, cd)
    bias_row = jnp.pad(bias.astype(jnp.float32),
                       (0, out_pad - out_feats)).reshape(1, out_pad)

    # ---- put the narrower feature width on the N^2-sized matmul ------------
    if in_pad < out_pad:
        # (adj @ x) @ W : N^2 matmul contracts over in_pad
        zero_b = jnp.zeros((1, in_pad), jnp.float32)
        agg = _aggregate(adj_p, x_p, zero_b, cd, tm_r, tk_r,
                         adj_buffer_count=adj_buffer_count,
                         resident_rhs_bytes=resident_rhs_bytes)
        out_p = _dense_matmul(agg, w_p, bias_row, out_dtype, td_r)
    else:
        # adj @ (x @ W) : canonical GCN order
        zero_b = jnp.zeros((1, out_pad), jnp.float32)
        support = _dense_matmul(x_p, w_p, zero_b, cd, td_r)
        out_p = _aggregate(adj_p, support, bias_row, out_dtype, tm_r, tk_r,
                           adj_buffer_count=adj_buffer_count,
                           resident_rhs_bytes=resident_rhs_bytes)

    return out_p[:n, :out_feats]


# --------------------------------------------------------------------------
# Self-test
# --------------------------------------------------------------------------
if __name__ == "__main__":
    key = jax.random.PRNGKey(0)

    def make_problem(k, n, in_feats, out_feats, x_dtype=jnp.float32):
        k_x, k_adj, k_w, k_b = jax.random.split(k, 4)
        x = jax.random.normal(k_x, (n, in_feats),
                              dtype=jnp.float32).astype(x_dtype)
        a = jax.random.uniform(k_adj, (n, n), dtype=jnp.float32)
        adj = (a + a.T) * 0.5
        stdv = 1.0 / math.sqrt(out_feats)   # mirrors reset_parameters()
        weight = jax.random.uniform(k_w, (in_feats, out_feats),
                                    dtype=jnp.float32,
                                    minval=-stdv, maxval=stdv)
        bias = jax.random.uniform(k_b, (out_feats,), dtype=jnp.float32,
                                  minval=-stdv, maxval=stdv)
        return x, adj, weight, bias

    def ref(x, adj, w, b):
        return adj @ (x.astype(jnp.float32) @ w) + b[None, :]

    ks = jax.random.split(key, 8)

    # 1) tiny single-tile problem, canonical order.
    x, adj, w, b = make_problem(ks[0], 64, 32, 32)
    out = jax.block_until_ready(graph_convolution(x, adj, w, b))
    assert out.shape == (64, 32)
    assert jnp.allclose(out, ref(x, adj, w, b), atol=1e-3, rtol=1e-3), "case-1"

    # 2) non-128-aligned N (padding path) + several row tiles.
    x, adj, w, b = make_problem(ks[1], 300, 48, 96)
    out = jax.block_until_ready(graph_convolution(x, adj, w, b))
    assert out.shape == (300, 96)
    assert jnp.allclose(out, ref(x, adj, w, b), atol=1e-3, rtol=1e-3), "case-2"

    # 3) out_feats >> in_feats -> re-associated (adj @ x) @ W path.
    x, adj, w, b = make_problem(ks[2], 256, 40, 200)
    out = jax.block_until_ready(graph_convolution(x, adj, w, b))
    assert out.shape == (256, 200)
    assert jnp.allclose(out, ref(x, adj, w, b), atol=1e-3, rtol=1e-3), "case-3"

    # 4) multi-K-tile accumulation with a VMEM-resident support block
    #    (also exercises the "no adjacency copy" path, 384 % 128 == 0).
    x, adj, w, b = make_problem(ks[3], 384, 32, 64)
    out = jax.block_until_ready(graph_convolution(x, adj, w, b, tm=128, tk=128))
    assert out.shape == (384, 64)
    assert jnp.allclose(out, ref(x, adj, w, b), atol=1e-3, rtol=1e-3), "case-4"

    # 5) same shapes, but force the streamed (non-resident) support path.
    out = jax.block_until_ready(
        graph_convolution(x, adj, w, b, tm=128, tk=128, resident_rhs_bytes=0))
    assert jnp.allclose(out, ref(x, adj, w, b), atol=1e-3, rtol=1e-3), "case-5"

    # 6) bf16 activations + bf16 compute (scratch-accumulator path);
    #    accumulation is f32, but operands are bf16 -> loose tolerance.
    x, adj, w, b = make_problem(ks[4], 200, 64, 64, x_dtype=jnp.bfloat16)
    out = jax.block_until_ready(
        graph_convolution(x, adj, w, b, compute_dtype=jnp.bfloat16))
    assert out.shape == (200, 64) and out.dtype == jnp.bfloat16
    assert jnp.allclose(out.astype(jnp.float32), ref(x, adj, w, b),
                        atol=0.5, rtol=0.1), "case-6"

    print("KERNEL_OK")
</pallas_src>

<mosaic_0001>
module attributes {stable_mosaic.version = 11 : i64} {
  func.func @_dense_kernel(%arg0: i32, %arg1: memref<128x128xf32, #tpu.memory_space<vmem>>, %arg2: memref<128x128xf32, #tpu.memory_space<vmem>>, %arg3: memref<1x128xf32, #tpu.memory_space<vmem>>, %arg4: memref<128x128xf32, #tpu.memory_space<vmem>>) attributes {dimension_semantics = [#tpu.dimension_semantics<parallel>], iteration_bounds = array<i64: 1>, scalar_prefetch = 0 : i64, scratch_operands = 0 : i64, tpu.core_type = #tpu.core_type<tc>, window_params = [{transform_indices = @transform_0, window_bounds = array<i64: 128, 128>}, {pipeline_mode = #tpu.pipeline_mode<synchronous>, transform_indices = @transform_1, window_bounds = array<i64: 128, 128>}, {pipeline_mode = #tpu.pipeline_mode<synchronous>, transform_indices = @transform_2, window_bounds = array<i64: 1, 128>}, {transform_indices = @transform_3, window_bounds = array<i64: 128, 128>}]} {
    %c0 = arith.constant 0 : index
    %c0_0 = arith.constant 0 : index
    %0 = vector.load %arg1[%c0, %c0_0] : memref<128x128xf32, #tpu.memory_space<vmem>>, vector<128x128xf32>
    %c0_1 = arith.constant 0 : index
    %c0_2 = arith.constant 0 : index
    %1 = vector.load %arg2[%c0_1, %c0_2] : memref<128x128xf32, #tpu.memory_space<vmem>>, vector<128x128xf32>
    %cst = arith.constant dense<0.000000e+00> : vector<128x128xf32>
    %2 = tpu.matmul %0, %1, %cst {dimension_numbers = #tpu.dot_dimension_numbers<[1], [0], [0], [1], [0, 0, 1, 1], [], []>} : vector<128x128xf32>, vector<128x128xf32>, vector<128x128xf32> -> vector<128x128xf32>
    %c0_3 = arith.constant 0 : index
    %c0_4 = arith.constant 0 : index
    %3 = vector.load %arg3[%c0_3, %c0_4] : memref<1x128xf32, #tpu.memory_space<vmem>>, vector<1x128xf32>
    %4 = vector.broadcast %3 : vector<1x128xf32> to vector<128x128xf32>
    %5 = arith.addf %2, %4 : vector<128x128xf32>
    %c0_5 = arith.constant 0 : index
    %c0_6 = arith.constant 0 : index
    %6 = vector.load %arg4[%c0_5, %c0_6] : memref<128x128xf32, #tpu.memory_space<vmem>>, vector<128x128xf32>
    tpu.vector_store %arg4[%c0_5, %c0_6], %5 {strides = array<i32>} : memref<128x128xf32, #tpu.memory_space<vmem>>, vector<128x128xf32>,
    return
  }
  func.func @transform_0(%arg0: i32) -> (i32, i32) {
    %c0_i32 = arith.constant 0 : i32
    %c0_i32_0 = arith.constant 0 : i32
    return %arg0, %c0_i32 : i32, i32
  }
  func.func @transform_1(%arg0: i32) -> (i32, i32) {
    %c0_i32 = arith.constant 0 : i32
    %c0_i32_0 = arith.constant 0 : i32
    %c0_i32_1 = arith.constant 0 : i32
    return %c0_i32, %c0_i32_0 : i32, i32
  }
  func.func @transform_2(%arg0: i32) -> (i32, i32) {
    %c0_i32 = arith.constant 0 : i32
    %c0_i32_0 = arith.constant 0 : i32
    %c0_i32_1 = arith.constant 0 : i32
    return %c0_i32, %c0_i32_0 : i32, i32
  }
  func.func @transform_3(%arg0: i32) -> (i32, i32) {
    %c0_i32 = arith.constant 0 : i32
    %c0_i32_0 = arith.constant 0 : i32
    return %arg0, %c0_i32 : i32, i32
  }
}

</mosaic_0001>

<bundles_post_ra>
// kernel: tpu_custom_call.1
= control target key start
LH: loop header
LB: loop body
LE: loop exit
PB: predicated region body
PF: predicated region fallthrough
CT: control target
= control target key end

     0   :  { %8 = vsyncpa [#allocation3], 0  ;;  %s499_s0 = inlined_call_operand.hbm [shape: f32[128,128], index: 0, kind: input, shape index: {}]   ;;  %s500_s1 = inlined_call_operand.hbm [shape: f32[128,128], index: 1, kind: input, shape index: {}]   ;;  %s501_s2 = inlined_call_operand.vmem [shape: f32[1,128], index: 2, kind: input, shape index: {}]   ;;  %s502_s3 = inlined_call_operand.hbm [shape: f32[128,128], index: 3, kind: output, shape index: {}]  }
   0x1   :  { %9 = vsyncpa [#allocation6], 0 }
   0x2   :  { %10 = vsyncpa [#allocation4], 0  ;;  %s453_s12 = smov [#allocation2]  }
   0x3   :  { %s16_s13 = sshll.u32 %s453_s12, 4  ;;  %s17_s13 = int_to_ptr.vmem [resolvable:$true] %s16_s13 }
   0x4   :  { %s395_s14 = scalar_lea.vmem %s17_s13, 2048  ;;  %p400_p1 = scmp.lt.s32.totalorder %s17_s13, %s17_s13 }
   0x5   :  { %p396_p0 = scmp.ne.s32.totalorder %s17_s13, %s395_s14  ;;  %p401_p2 = scmp.lt.s32.totalorder %s395_s14, %s395_s14 }
   0x7   :  { %p402_p3 = por %p401_p2, %p400_p1 }
   0x9   :  { %p403_p4 = pnand %p402_p3, %p396_p0 }
   0xb   :  { %406 = shalt.err (!%p403_p4)
}
   0xc   :  { %s454_s15 = smov 128   ;;  %s455_s16 = smov 8  }
   0xd   :  { %22 = dma.hbm_to_vmem [thread:$0]  %s499_s0, 2048, %s17_s13, [#allocation3], %s454_s15, %s454_s15, %s455_s16  }
   0xe   :  { %s456_s19 = smov [#allocation5]  }
   0xf   :  { %s28_s20 = sshll.u32 %s456_s19, 4  ;;  %s29_s20 = int_to_ptr.vmem [resolvable:$true] %s28_s20 }
  0x10   :  { %s415_s21 = scalar_lea.vmem %s29_s20, 2048  ;;  %p420_p6 = scmp.lt.s32.totalorder %s29_s20, %s29_s20 }
  0x11   :  { %p416_p5 = scmp.ne.s32.totalorder %s29_s20, %s415_s21  ;;  %p421_p7 = scmp.lt.s32.totalorder %s415_s21, %s415_s21 }
  0x13   :  { %p422_p8 = por %p421_p7, %p420_p6 }
  0x15   :  { %p423_p9 = pnand %p422_p8, %p416_p5 }
  0x17   :  { %426 = shalt.err (!%p423_p9)
}
  0x18   :  { %34 = dma.hbm_to_vmem [thread:$0]  %s500_s1, 2048, %s29_s20, [#allocation6], %s454_s15, %s454_s15, %s455_s16  }
  0x19   :  { %447 = dma.done.wait [#allocation3], 2048  }
  0x1a   :  { %448 = vsyncadd [#allocation3], 4294965248 }
  0x1b   :  { %449 = dma.done.wait [#allocation6], 2048  }
  0x1c   :  { %450 = vsyncadd [#allocation6], 4294965248  ;;  %v74_v0 = vld [vmem:[#allocation5 + $0x78] sm:$0xff]  ;;  %v73_v1 = vld [vmem:[#allocation5 + $0x70] sm:$0xff] }
  0x1d   :  { %294 = vmatprep.subr.mxu0 %v74_v0  ;;  %350 = vmatprep.subr.mxu1 %v74_v0  ;;  %v72_v2 = vld [vmem:[#allocation5 + $0x68] sm:$0xff]  ;;  %v71_v3 = vld [vmem:[#allocation5 + $0x60] sm:$0xff]  ;;  %v70_v4 = vld [vmem:[#allocation5 + $0x58] sm:$0xff] }
  0x1e   :  { %295 = vmatpush3.msra.mxu0 %v74_v0  ;;  %366 = vmatpush3.msra.mxu1 %v74_v0  ;;  %v69_v5 = vld [vmem:[#allocation5 + $0x50] sm:$0xff]  ;;  %v68_v6 = vld [vmem:[#allocation5 + $0x48] sm:$0xff]  ;;  %v67_v7 = vld [vmem:[#allocation5 + $0x40] sm:$0xff] }
  0x1f   :  { %296 = vmatprep.subr.mxu0 %v73_v1  ;;  %351 = vmatprep.subr.mxu1 %v73_v1  ;;  %v66_v8 = vld [vmem:[#allocation5 + $0x38] sm:$0xff]  ;;  %v65_v9 = vld [vmem:[#allocation5 + $0x30] sm:$0xff]  ;;  %v64_v10 = vld [vmem:[#allocation5 + $0x28] sm:$0xff] }
  0x20   :  { %297 = vmatpush3.msra.mxu0 %v73_v1  ;;  %367 = vmatpush3.msra.mxu1 %v73_v1  ;;  %v63_v11 = vld [vmem:[#allocation5 + $0x20] sm:$0xff]  ;;  %v62_v12 = vld [vmem:[#allocation5 + $0x18] sm:$0xff]  ;;  %v61_v13 = vld [vmem:[#allocation5 + $0x10] sm:$0xff] }
  0x21   :  { %298 = vmatprep.subr.mxu0 %v72_v2  ;;  %352 = vmatprep.subr.mxu1 %v72_v2  ;;  %v60_v14 = vld [vmem:[#allocation5 + $0x8] sm:$0xff]  ;;  %v59_v15 = vld [vmem:[#allocation5] sm:$0xff]  ;;  %v45_v20 = vld [vmem:[#allocation2 + $0x10] sm:$0xff] }
  0x22   :  { %299 = vmatpush3.msra.mxu0 %v72_v2  ;;  %368 = vmatpush3.msra.mxu1 %v72_v2  ;;  %v43_v16 = vld [vmem:[#allocation2] sm:$0xff]  ;;  %v44_v18 = vld [vmem:[#allocation2 + $0x8] sm:$0xff]  ;;  %v53_v21 = vld [vmem:[#allocation2 + $0x50] sm:$0xff] }
  0x23   :  { %300 = vmatprep.subr.mxu0 %v71_v3  ;;  %353 = vmatprep.subr.mxu1 %v71_v3  ;;  %v51_v17 = vld [vmem:[#allocation2 + $0x40] sm:$0xff]  ;;  %v52_v19 = vld [vmem:[#allocation2 + $0x48] sm:$0xff]  ;;  %v46_v22 = vld [vmem:[#allocation2 + $0x18] sm:$0xff] }
  0x24   :  { %301 = vmatpush3.msra.mxu0 %v71_v3  ;;  %369 = vmatpush3.msra.mxu1 %v71_v3  ;;  %v54_v23 = vld [vmem:[#allocation2 + $0x58] sm:$0xff]  ;;  %v47_v24 = vld [vmem:[#allocation2 + $0x20] sm:$0xff]  ;;  %v48_v26 = vld [vmem:[#allocation2 + $0x28] sm:$0xff] }
  0x25   :  { %302 = vmatprep.subr.mxu0 %v70_v4  ;;  %354 = vmatprep.subr.mxu1 %v70_v4  ;;  %v55_v25 = vld [vmem:[#allocation2 + $0x60] sm:$0xff]  ;;  %v56_v27 = vld [vmem:[#allocation2 + $0x68] sm:$0xff]  ;;  %v49_v28 = vld [vmem:[#allocation2 + $0x30] sm:$0xff] }
  0x26   :  { %303 = vmatpush3.msra.mxu0 %v70_v4  ;;  %370 = vmatpush3.msra.mxu1 %v70_v4  ;;  %v57_v29 = vld [vmem:[#allocation2 + $0x70] sm:$0xff]  ;;  %v50_v30 = vld [vmem:[#allocation2 + $0x38] sm:$0xff]  ;;  %v261_v32 = vld [vmem:[%s501_s2] ss:$0 sm:$0xff]  ;;  %s457_s2 = smov [#allocation7]  }
  0x27   :  { %304 = vmatprep.subr.mxu0 %v69_v5  ;;  %355 = vmatprep.subr.mxu1 %v69_v5  ;;  %v58_v31 = vld [vmem:[#allocation2 + $0x78] sm:$0xff]  ;;  %s248_s24 = sshll.u32 %s457_s2, 4  ;;  %s249_s24 = int_to_ptr.vmem [resolvable:$true] %s248_s24 }
  0x28   :  { %305 = vmatpush3.msra.mxu0 %v69_v5  ;;  %371 = vmatpush3.msra.mxu1 %v69_v5  ;;  %s427_s25 = scalar_lea.vmem %s249_s24, 2048  ;;  %p432_p11 = scmp.lt.s32.totalorder %s249_s24, %s249_s24 }
  0x29   :  { %306 = vmatprep.subr.mxu0 %v68_v6  ;;  %356 = vmatprep.subr.mxu1 %v68_v6  ;;  %p428_p10 = scmp.ne.s32.totalorder %s249_s24, %s427_s25  ;;  %p433_p12 = scmp.lt.s32.totalorder %s427_s25, %s427_s25 }
  0x2a   :  { %307 = vmatpush3.msra.mxu0 %v68_v6  ;;  %372 = vmatpush3.msra.mxu1 %v68_v6 }
  0x2b   :  { %308 = vmatprep.subr.mxu0 %v67_v7  ;;  %357 = vmatprep.subr.mxu1 %v67_v7  ;;  %p434_p13 = por %p433_p12, %p432_p11 }
  0x2c   :  { %309 = vmatpush3.msra.mxu0 %v67_v7  ;;  %373 = vmatpush3.msra.mxu1 %v67_v7 }
  0x2d   :  { %310 = vmatprep.subr.mxu0 %v66_v8  ;;  %358 = vmatprep.subr.mxu1 %v66_v8  ;;  %p435_p0 = pnand %p434_p13, %p428_p10 }
  0x2e   :  { %311 = vmatpush3.msra.mxu0 %v66_v8  ;;  %374 = vmatpush3.msra.mxu1 %v66_v8 }
  0x2f   :  { %312 = vmatprep.subr.mxu0 %v65_v9  ;;  %359 = vmatprep.subr.mxu1 %v65_v9 }
  0x30   :  { %313 = vmatpush3.msra.mxu0 %v65_v9  ;;  %375 = vmatpush3.msra.mxu1 %v65_v9 }
  0x31   :  { %314 = vmatprep.subr.mxu0 %v64_v10  ;;  %360 = vmatprep.subr.mxu1 %v64_v10 }
  0x32   :  { %315 = vmatpush3.msra.mxu0 %v64_v10  ;;  %376 = vmatpush3.msra.mxu1 %v64_v10 }
  0x33   :  { %316 = vmatprep.subr.mxu0 %v63_v11  ;;  %361 = vmatprep.subr.mxu1 %v63_v11 }
  0x34   :  { %317 = vmatpush3.msra.mxu0 %v63_v11  ;;  %377 = vmatpush3.msra.mxu1 %v63_v11 }
  0x35   :  { %318 = vmatprep.subr.mxu0 %v62_v12  ;;  %362 = vmatprep.subr.mxu1 %v62_v12 }
  0x36   :  { %319 = vmatpush3.msra.mxu0 %v62_v12  ;;  %378 = vmatpush3.msra.mxu1 %v62_v12 }
  0x37   :  { %320 = vmatprep.subr.mxu0 %v61_v13  ;;  %363 = vmatprep.subr.mxu1 %v61_v13 }
  0x38   :  { %321 = vmatpush3.msra.mxu0 %v61_v13  ;;  %379 = vmatpush3.msra.mxu1 %v61_v13 }
  0x39   :  { %322 = vmatprep.subr.mxu0 %v60_v14  ;;  %364 = vmatprep.subr.mxu1 %v60_v14 }
  0x3a   :  { %323 = vmatpush3.msra.mxu0 %v60_v14  ;;  %380 = vmatpush3.msra.mxu1 %v60_v14 }
  0x3b   :  { %324 = vmatprep.subr.mxu0 %v59_v15  ;;  %365 = vmatprep.subr.mxu1 %v59_v15 }
  0x3c   :  { %325 = vmatpush3.msra.mxu0 %v59_v15  ;;  %381 = vmatpush3.msra.mxu1 %v59_v15 }
  0x3d   :  { %326 = vmatprep.mubr.f32.mxu0 %v43_v16  ;;  %338 = vmatprep.mubr.f32.mxu1 %v51_v17 }
  0x3e   :  { %327 = vmatmul.mubr.f32.vlgmr.msra.gmra.mxu0 %v44_v18  ;;  %339 = vmatmul.mubr.f32.vlgmr.msra.gmra.mxu1 %v52_v19 }
  0x3f   :  { %329 = vmatprep.mubr.f32.mxu0 %v45_v20  ;;  %341 = vmatprep.mubr.f32.mxu1 %v53_v21 }
  0x42   :  { %330 = vmatmul.mubr.f32.gmra.mxu0 %v46_v22  ;;  %342 = vmatmul.mubr.f32.gmra.mxu1 %v54_v23 }
  0x43   :  { %332 = vmatprep.mubr.f32.mxu0 %v47_v24  ;;  %344 = vmatprep.mubr.f32.mxu1 %v55_v25 }
  0x46   :  { %333 = vmatmul.mubr.f32.gmra.mxu0 %v48_v26  ;;  %345 = vmatmul.mubr.f32.gmra.mxu1 %v56_v27 }
  0x47   :  { %335 = vmatprep.mubr.f32.mxu0 %v49_v28  ;;  %347 = vmatprep.mubr.f32.mxu1 %v57_v29 }
  0x4a   :  { %336 = vmatmul.mubr.f32.gmra.mxu0 %v50_v30  ;;  %348 = vmatmul.mubr.f32.gmra.mxu1 %v58_v31 }
  0xfe   :  { %v328_v33 = vpop.f32.mrf.mxu0  ;;  %v340_v34 = vpop.f32.mrf.mxu1 }
  0xff   :  { %v154_v35 = vadd.f32 %v328_v33, %v261_v32  ;;  %v194_v36 = vadd.f32 %v340_v34, %v261_v32 }
 0x100   :  { %v148_v37 = vpop.f32.mrf.mxu0  ;;  %v188_v38 = vpop.f32.mrf.mxu1 }
 0x101   :  { %228 = vst [vmem:[#allocation7 + $0x8] sm:$0xff] %v154_v35  ;;  %236 = vst [vmem:[#allocation7 + $0x48] sm:$0xff] %v194_v36  ;;  %v149_v39 = vadd.f32 %v261_v32, %v148_v37  ;;  %v189_v40 = vadd.f32 %v261_v32, %v188_v38 }
 0x102   :  { %v331_v41 = vpop.f32.mrf.mxu0  ;;  %v343_v42 = vpop.f32.mrf.mxu1 }
 0x103   :  { %227 = vst [vmem:[#allocation7] sm:$0xff] %v149_v39  ;;  %235 = vst [vmem:[#allocation7 + $0x40] sm:$0xff] %v189_v40  ;;  %v164_v43 = vadd.f32 %v331_v41, %v261_v32  ;;  %v204_v44 = vadd.f32 %v343_v42, %v261_v32 }
 0x104   :  { %v158_v45 = vpop.f32.mrf.mxu0  ;;  %v198_v46 = vpop.f32.mrf.mxu1 }
 0x105   :  { %230 = vst [vmem:[#allocation7 + $0x18] sm:$0xff] %v164_v43  ;;  %238 = vst [vmem:[#allocation7 + $0x58] sm:$0xff] %v204_v44  ;;  %v159_v47 = vadd.f32 %v261_v32, %v158_v45  ;;  %v199_v48 = vadd.f32 %v261_v32, %v198_v46 }
 0x106   :  { %v334_v49 = vpop.f32.mrf.mxu0  ;;  %v346_v50 = vpop.f32.mrf.mxu1 }
 0x107   :  { %229 = vst [vmem:[#allocation7 + $0x10] sm:$0xff] %v159_v47  ;;  %237 = vst [vmem:[#allocation7 + $0x50] sm:$0xff] %v199_v48  ;;  %v174_v51 = vadd.f32 %v334_v49, %v261_v32  ;;  %v214_v52 = vadd.f32 %v346_v50, %v261_v32 }
 0x108   :  { %v168_v53 = vpop.f32.mrf.mxu0  ;;  %v208_v54 = vpop.f32.mrf.mxu1 }
 0x109   :  { %232 = vst [vmem:[#allocation7 + $0x28] sm:$0xff] %v174_v51  ;;  %240 = vst [vmem:[#allocation7 + $0x68] sm:$0xff] %v214_v52  ;;  %v169_v55 = vadd.f32 %v261_v32, %v168_v53  ;;  %v209_v56 = vadd.f32 %v261_v32, %v208_v54 }
 0x10a   :  { %v337_v57 = vpop.f32.mrf.mxu0  ;;  %v349_v58 = vpop.f32.mrf.mxu1 }
 0x10b   :  { %231 = vst [vmem:[#allocation7 + $0x20] sm:$0xff] %v169_v55  ;;  %239 = vst [vmem:[#allocation7 + $0x60] sm:$0xff] %v209_v56  ;;  %v184_v59 = vadd.f32 %v337_v57, %v261_v32  ;;  %v224_v60 = vadd.f32 %v349_v58, %v261_v32 }
 0x10c   :  { %v178_v61 = vpop.f32.mrf.mxu0  ;;  %v218_v62 = vpop.f32.mrf.mxu1 }
 0x10d   :  { %234 = vst [vmem:[#allocation7 + $0x38] sm:$0xff] %v184_v59  ;;  %242 = vst [vmem:[#allocation7 + $0x78] sm:$0xff] %v224_v60  ;;  %v179_v63 = vadd.f32 %v261_v32, %v178_v61  ;;  %v219_v0 = vadd.f32 %v261_v32, %v218_v62 }
 0x10f   :  { %233 = vst [vmem:[#allocation7 + $0x30] sm:$0xff] %v179_v63  ;;  %241 = vst [vmem:[#allocation7 + $0x70] sm:$0xff] %v219_v0 }
 0x110   :  { %438 = shalt.err (!%p435_p0)
}
 0x111   :  { %254 = dma.vmem_to_hbm [thread:$0]  %s249_s24, 2048, %s502_s3, [#allocation4], %s454_s15, %s454_s15, %s455_s16  }
 0x112   :  { %451 = dma.done.wait [#allocation4], 2048  }
 0x113   :  { %452 = vsyncadd [#allocation4], 4294965248 }
 0x114   :  { %258 = vsyncpa [#allocation3], 1 }
 0x115   :  { %259 = vsyncpa [#allocation6], 1 }
 0x116   :  { %260 = vsyncpa [#allocation4], 1 }

</bundles_post_ra>
